<compile_context>
chip_gen: v6e
topology: v6e:2x2x1
jax: 0.10.0
libtpu: 0.0.40
codegen_flags: <defaults>
</compile_context>

<pallas_src>
import math

import jax
import jax.numpy as jnp
from jax.experimental import pallas as pl
from jax.experimental.pallas import tpu as pltpu

HIDDEN = 100            # nn.Linear(num_inputs, 100)
HIDDEN_PAD = 128        # lane-dense padded hidden width
MAX_TILE_B = 4096       # rows per grid step (VMEM budget: ~16 MiB worst case)
VMEM_LIMIT_BYTES = 40 * 1024 * 1024


def _round_up(n, m):
    return ((n + m - 1) // m) * m


def _cdiv(a, b):
    return (a + b - 1) // b


def critic_kernel(x_ref, w1_ref, b1_ref, w2_ref, b2_ref, out_ref):
    # x_ref : (tile_b, num_inputs) f32   (streamed from HBM, double-buffered)
    # w1_ref: (num_inputs, 128)    bf16  (VMEM-resident; cols >= HIDDEN are zero)
    # b1_ref: (1, 128)             f32   (entries >= HIDDEN are zero)
    # w2_ref: (1, 128)             f32   (entries >= HIDDEN are zero)
    # b2_ref: (1, 1)               f32   (SMEM scalar)
    # out_ref: (tile_b, 1)         f32
    x = x_ref[...].astype(jnp.bfloat16)            # VPU cast; MXU gets native bf16
    h = jnp.dot(x, w1_ref[...], preferred_element_type=jnp.float32)
    h = jnp.maximum(h + b1_ref[...], 0.0)          # bias + ReLU on the VPU
    # Second linear (HIDDEN -> 1): VPU multiply + lane reduce (skip the MXU).
    v = jnp.sum(h * w2_ref[...], axis=-1, keepdims=True) + b2_ref[0, 0]
    out_ref[...] = v.astype(out_ref.dtype)


def prepare_critic_params(params):
    """One-time parameter prep (hoisted out of the per-call hot path)."""
    w1, b1, w2, b2 = params
    pad_h = HIDDEN_PAD - HIDDEN
    w1p = jnp.pad(w1.astype(jnp.bfloat16), ((0, 0), (0, pad_h)))            # (ni, 128) bf16
    b1p = jnp.pad(b1.reshape(1, HIDDEN).astype(jnp.float32),
                  ((0, 0), (0, pad_h)))                                     # (1, 128) f32
    w2p = jnp.pad(w2.reshape(1, HIDDEN).astype(jnp.float32),
                  ((0, 0), (0, pad_h)))                                     # (1, 128) f32
    b2p = b2.reshape(1, 1).astype(jnp.float32)                              # (1, 1)  f32
    return w1p, b1p, w2p, b2p


def critic_forward(x, prepared_params):
    """Pallas forward pass of Critic. x: (B, *feature_dims) float32."""
    w1p, b1p, w2p, b2p = prepared_params
    B = x.shape[0]
    x2 = x.reshape(B, -1)                       # torch.flatten(x, start_dim=1) (free)
    if x2.dtype != jnp.float32:
        x2 = x2.astype(jnp.float32)
    num_inputs = x2.shape[1]
    assert num_inputs == w1p.shape[0], "num_inputs mismatch"

    # Large, sublane-aligned tiles, but keep >= 2 grid steps when B allows
    # (so v7x megacore can shard the "parallel" axis).
    tile_b = max(8, min(MAX_TILE_B, _round_up(_cdiv(B, 2), 8)))
    if B < tile_b:
        # Only for tiny batches (B < 8): pad so the block fits inside the array.
        x2 = jnp.pad(x2, ((0, tile_b - B), (0, 0)))
    n_steps = _cdiv(max(B, tile_b), tile_b)     # ragged last block when B % tile_b != 0

    out = pl.pallas_call(
        critic_kernel,
        out_shape=jax.ShapeDtypeStruct((n_steps * tile_b, 1), jnp.float32),
        grid=(n_steps,),
        in_specs=[
            pl.BlockSpec((tile_b, num_inputs), lambda i: (i, 0)),      # x stream
            pl.BlockSpec((num_inputs, HIDDEN_PAD), lambda i: (0, 0)),  # w1 resident
            pl.BlockSpec((1, HIDDEN_PAD), lambda i: (0, 0)),           # b1 resident
            pl.BlockSpec((1, HIDDEN_PAD), lambda i: (0, 0)),           # w2 resident
            pl.BlockSpec(memory_space=pltpu.MemorySpace.SMEM),         # b2 scalar
        ],
        out_specs=pl.BlockSpec((tile_b, 1), lambda i: (i, 0)),
        compiler_params=pltpu.CompilerParams(
            dimension_semantics=("parallel",),
            vmem_limit_bytes=VMEM_LIMIT_BYTES,
        ),
    )(x2, w1p, b1p, w2p, b2p)

    # Rows >= B hold values computed from unspecified padding; always slice.
    return out[:B]


def init_critic_params(key, num_inputs):
    """Deterministic init matching nn.Linear's default uniform(-1/sqrt(fan_in), ...)."""
    k1, k2, k3, k4 = jax.random.split(key, 4)
    bound1 = 1.0 / math.sqrt(num_inputs)
    bound2 = 1.0 / math.sqrt(HIDDEN)
    w1 = jax.random.uniform(k1, (num_inputs, HIDDEN), jnp.float32, -bound1, bound1)
    b1 = jax.random.uniform(k2, (1, HIDDEN), jnp.float32, -bound1, bound1)
    w2 = jax.random.uniform(k3, (HIDDEN, 1), jnp.float32, -bound2, bound2)
    b2 = jax.random.uniform(k4, (1, 1), jnp.float32, -bound2, bound2)
    return w1, b1, w2, b2


def critic_ref(x, params):
    """Pure-JAX reference mirroring the kernel numerics (bf16 inputs, f32 accumulate)."""
    w1, b1, w2, b2 = params
    x2 = x.reshape(x.shape[0], -1)
    h = jnp.dot(x2.astype(jnp.bfloat16), w1.astype(jnp.bfloat16),
                preferred_element_type=jnp.float32) + b1.reshape(1, -1)
    h = jnp.maximum(h, 0.0)
    return h @ w2.reshape(-1, 1) + b2.reshape(1, 1)


if __name__ == "__main__":
    key = jax.random.PRNGKey(0)
    k_x, k_p = jax.random.split(key)

    # highway-env style observation: (batch, vehicles, features) = (2, 5, 5)
    # -> flatten(start_dim=1) gives num_inputs = 25.
    B, V, F_ = 2, 5, 5
    num_inputs = V * F_
    x = jax.random.normal(k_x, (B, V, F_), dtype=jnp.float32)

    raw_params = init_critic_params(k_p, num_inputs)
    params = prepare_critic_params(raw_params)

    value = jax.block_until_ready(critic_forward(x, params))
    ref = critic_ref(x, raw_params)
    assert value.shape == (B, 1)
    assert jnp.allclose(value, ref, atol=2e-3, rtol=2e-3), (value, ref)

    # Batch that is not a multiple of the tile size (exercises >=2 grid steps
    # and the ragged last x block with no wrapper padding).
    B2 = 37
    x_big = jax.random.normal(jax.random.PRNGKey(1), (B2, V, F_), dtype=jnp.float32)
    value_big = jax.block_until_ready(critic_forward(x_big, params))
    ref_big = critic_ref(x_big, raw_params)
    assert value_big.shape == (B2, 1)
    assert jnp.allclose(value_big, ref_big, atol=2e-3, rtol=2e-3)

    print("KERNEL_OK")
</pallas_src>

<mosaic_0001>
module attributes {stable_mosaic.version = 11 : i64} {
  func.func @critic_kernel(%arg0: i32, %arg1: memref<8x25xf32, #tpu.memory_space<vmem>>, %arg2: memref<25x128xbf16, #tpu.memory_space<vmem>>, %arg3: memref<1x128xf32, #tpu.memory_space<vmem>>, %arg4: memref<1x128xf32, #tpu.memory_space<vmem>>, %arg5: memref<1x1xf32, #tpu.memory_space<smem>>, %arg6: memref<8x1xf32, #tpu.memory_space<vmem>>) attributes {dimension_semantics = [#tpu.dimension_semantics<parallel>], iteration_bounds = array<i64: 1>, scalar_prefetch = 0 : i64, scratch_operands = 0 : i64, tpu.core_type = #tpu.core_type<tc>, window_params = [{transform_indices = @transform_0, window_bounds = array<i64: 8, 25>}, {pipeline_mode = #tpu.pipeline_mode<synchronous>, transform_indices = @transform_1, window_bounds = array<i64: 25, 128>}, {pipeline_mode = #tpu.pipeline_mode<synchronous>, transform_indices = @transform_2, window_bounds = array<i64: 1, 128>}, {pipeline_mode = #tpu.pipeline_mode<synchronous>, transform_indices = @transform_3, window_bounds = array<i64: 1, 128>}, {transform_indices = @transform_4, window_bounds = array<i64: 1, 1>}, {transform_indices = @transform_5, window_bounds = array<i64: 8, 1>}]} {
    %c0 = arith.constant 0 : index
    %c0_0 = arith.constant 0 : index
    %0 = vector.load %arg1[%c0, %c0_0] : memref<8x25xf32, #tpu.memory_space<vmem>>, vector<8x25xf32>
    %1 = arith.truncf %0 : vector<8x25xf32> to vector<8x25xbf16>
    %c0_1 = arith.constant 0 : index
    %c0_2 = arith.constant 0 : index
    %2 = vector.load %arg2[%c0_1, %c0_2] : memref<25x128xbf16, #tpu.memory_space<vmem>>, vector<25x128xbf16>
    %cst = arith.constant dense<0.000000e+00> : vector<8x128xf32>
    %3 = tpu.matmul %1, %2, %cst {dimension_numbers = #tpu.dot_dimension_numbers<[1], [0], [0], [1], [0, 0, 1, 1], [], []>} : vector<8x25xbf16>, vector<25x128xbf16>, vector<8x128xf32> -> vector<8x128xf32>
    %c0_3 = arith.constant 0 : index
    %c0_4 = arith.constant 0 : index
    %4 = vector.load %arg3[%c0_3, %c0_4] : memref<1x128xf32, #tpu.memory_space<vmem>>, vector<1x128xf32>
    %5 = vector.broadcast %4 : vector<1x128xf32> to vector<8x128xf32>
    %6 = arith.addf %3, %5 : vector<8x128xf32>
    %cst_5 = arith.constant 0.000000e+00 : f32
    %7 = vector.broadcast %cst_5 : f32 to vector<8x128xf32>
    %8 = arith.maximumf %6, %7 : vector<8x128xf32>
    %c0_6 = arith.constant 0 : index
    %c0_7 = arith.constant 0 : index
    %9 = vector.load %arg4[%c0_6, %c0_7] : memref<1x128xf32, #tpu.memory_space<vmem>>, vector<1x128xf32>
    %10 = vector.broadcast %9 : vector<1x128xf32> to vector<8x128xf32>
    %11 = arith.mulf %8, %10 : vector<8x128xf32>
    %cst_8 = arith.constant dense<0.000000e+00> : vector<8xf32>
    %12 = vector.multi_reduction <add>, %11, %cst_8 [1] : vector<8x128xf32> to vector<8xf32>
    %13 = vector.shape_cast %12 : vector<8xf32> to vector<8x1xf32>
    %c0_9 = arith.constant 0 : index
    %c0_10 = arith.constant 0 : index
    %14 = memref.load %arg5[%c0_9, %c0_10] : memref<1x1xf32, #tpu.memory_space<smem>>
    %15 = vector.broadcast %14 : f32 to vector<8x1xf32>
    %16 = arith.addf %13, %15 : vector<8x1xf32>
    %c0_11 = arith.constant 0 : index
    %c0_12 = arith.constant 0 : index
    %17 = vector.load %arg6[%c0_11, %c0_12] : memref<8x1xf32, #tpu.memory_space<vmem>>, vector<8x1xf32>
    tpu.vector_store %arg6[%c0_11, %c0_12], %16 {strides = array<i32>} : memref<8x1xf32, #tpu.memory_space<vmem>>, vector<8x1xf32>,
    return
  }
  func.func @transform_0(%arg0: i32) -> (i32, i32) {
    %c0_i32 = arith.constant 0 : i32
    %c0_i32_0 = arith.constant 0 : i32
    return %arg0, %c0_i32 : i32, i32
  }
  func.func @transform_1(%arg0: i32) -> (i32, i32) {
    %c0_i32 = arith.constant 0 : i32
    %c0_i32_0 = arith.constant 0 : i32
    %c0_i32_1 = arith.constant 0 : i32
    return %c0_i32, %c0_i32_0 : i32, i32
  }
  func.func @transform_2(%arg0: i32) -> (i32, i32) {
    %c0_i32 = arith.constant 0 : i32
    %c0_i32_0 = arith.constant 0 : i32
    %c0_i32_1 = arith.constant 0 : i32
    return %c0_i32, %c0_i32_0 : i32, i32
  }
  func.func @transform_3(%arg0: i32) -> (i32, i32) {
    %c0_i32 = arith.constant 0 : i32
    %c0_i32_0 = arith.constant 0 : i32
    %c0_i32_1 = arith.constant 0 : i32
    return %c0_i32, %c0_i32_0 : i32, i32
  }
  func.func @transform_4(%arg0: i32) -> (i32, i32) {
    %c0_i32 = arith.constant 0 : i32
    %c0_i32_0 = arith.constant 0 : i32
    %c0_i32_1 = arith.constant 0 : i32
    return %c0_i32, %c0_i32_0 : i32, i32
  }
  func.func @transform_5(%arg0: i32) -> (i32, i32) {
    %c0_i32 = arith.constant 0 : i32
    %c0_i32_0 = arith.constant 0 : i32
    return %arg0, %c0_i32 : i32, i32
  }
}

</mosaic_0001>

<bundles_post_ra>
// kernel: tpu_custom_call.1
= control target key start
LH: loop header
LB: loop body
LE: loop exit
PB: predicated region body
PF: predicated region fallthrough
CT: control target
= control target key end

     0   :  { %11 = vsyncpa [#allocation4], 0  ;;  %s269_s0 = inlined_call_operand.hbm [shape: f32[8,25], index: 0, kind: input, shape index: {}]   ;;  %s270_s1 = inlined_call_operand.hbm [shape: bf16[25,128], index: 1, kind: input, shape index: {}]   ;;  %s271_s2 = inlined_call_operand.vmem [shape: f32[1,128], index: 2, kind: input, shape index: {}]   ;;  %s272_s3 = inlined_call_operand.vmem [shape: f32[1,128], index: 3, kind: input, shape index: {}]   ;;  %s273_s4 = inlined_call_operand.<no memory space> [shape: f32[1,1], index: 4, kind: input, shape index: {}]   ;;  %s274_s5 = inlined_call_operand.vmem [shape: f32[8,1], index: 5, kind: output, shape index: {}]  }
   0x1   :  { %12 = vsyncpa [#allocation6], 0  ;;  %s214_s18 = smov [#allocation3]   ;;  %s215_s20 = smov [#allocation5]  }
   0x2   :  { %s19_s19 = sshll.u32 %s214_s18, 4  ;;  %s28_s21 = sshll.u32 %s215_s20, 4  ;;  %s20_s19 = int_to_ptr.vmem [resolvable:$true] %s19_s19  ;;  %s29_s21 = int_to_ptr.vmem [resolvable:$true] %s28_s21 }
   0x3   :  { %s178_s22 = scalar_lea.vmem %s20_s19, 128  ;;  %p183_p1 = scmp.lt.s32.totalorder %s20_s19, %s20_s19 }
   0x4   :  { %p179_p0 = scmp.ne.s32.totalorder %s20_s19, %s178_s22  ;;  %p184_p2 = scmp.lt.s32.totalorder %s178_s22, %s178_s22 }
   0x6   :  { %p185_p3 = por %p184_p2, %p183_p1 }
   0x8   :  { %p186_p4 = pnand %p185_p3, %p179_p0 }
   0xa   :  { %189 = shalt.err (!%p186_p4)
}
   0xb   :  { %22 = dma.hbm_to_vmem [thread:$0]  %s269_s0, 128, %s20_s19, [#allocation4]  }
   0xc   :  { %s198_s25 = scalar_lea.vmem %s29_s21, 256  ;;  %p203_p6 = scmp.lt.s32.totalorder %s29_s21, %s29_s21 }
   0xd   :  { %p199_p5 = scmp.ne.s32.totalorder %s29_s21, %s198_s25  ;;  %p204_p7 = scmp.lt.s32.totalorder %s198_s25, %s198_s25 }
   0xf   :  { %p205_p8 = por %p204_p7, %p203_p6 }
  0x11   :  { %p206_p9 = pnand %p205_p8, %p199_p5 }
  0x13   :  { %209 = shalt.err (!%p206_p9)
}
  0x14   :  { %s216_s26 = smov 64   ;;  %s217_s27 = smov 4  }
  0x15   :  { %34 = dma.hbm_to_vmem [thread:$0]  %s270_s1, 256, %s29_s21, [#allocation6], %s216_s26, %s216_s26, %s217_s27  }
  0x16   :  { %210 = dma.done.wait [#allocation4], 128  }
  0x17   :  { %211 = vsyncadd [#allocation4], 4294967168 }
  0x18   :  { %212 = dma.done.wait [#allocation6], 256  }
  0x19   :  { %213 = vsyncadd [#allocation6], 4294967040  ;;  %vm76_vm0 = vcmask 1043456   ;;  %v218_v0 = vmov 0.0   ;;  %vm219_vm1 = vmmov 0   ;;  %vm77_vm2 = vcmask 1044480  }
  0x1a   :  { %153 = vmatprep.subr.bf16.mxu0 %v218_v0  ;;  %157 = vmatprep.mubr.msk.bf16.mxu0 %vm219_vm1, %v218_v0  ;;  %v220_v1 = vmov 65535   ;;  %v168_v4 = vld [vmem:[#allocation5 + $0x8] sm:$0x1f]   ;;  %v169_v6 = vld [vmem:[#allocation5] sm:$0xff]   ;;  %v48_v7 = vld [vmem:[#allocation3] sm:$0xff]  ;;  %vm72_vm3 = vcmask 203776   ;;  %v135_v18 = vstv %s273_s4 }
  0x1b   :  { %v78_v2 = vsel %vm76_vm0, 4294967295, %v220_v1  ;;  %v49_v8 = vpack.c.bf16 %v48_v7, %v48_v7  ;;  %v145_v9 = vld [vmem:[%s271_s2] ss:$0 sm:$0xff]  ;;  %vm137_vm4 = vcmask 7168  }
  0x1c   :  { %v79_v3 = vsel %vm77_vm2, %v78_v2, 0  ;;  %v149_v13 = vld [vmem:[%s272_s3] ss:$0 sm:$0xff] }
  0x1d   :  { %v81_v5 = vand.u32 %v168_v4, %v79_v3 }
  0x1f   :  { %154 = vmatpush3.bf16.msra.mxu0 %v81_v5 }
  0x20   :  { %155 = vmatprep.subr.bf16.mxu0 %v218_v0 }
  0x23   :  { %156 = vmatpush3.bf16.msra.mxu0 %v169_v6 }
  0x26   :  { %158 = vmatmul.mubr.msk.bf16.vlgmr.msra.gmra.mxu0 %vm72_vm3, %v49_v8 }
  0xe6   :  { %v117_v10 = vpop.f32.mrf.mxu0 }
  0xe7   :  { %v118_v11 = vadd.f32 %v145_v9, %v117_v10 }
  0xe8   :  { %v159_v12 = vpop.f32.mrf.mxu0 }
  0xe9   :  { %v123_v14 = vmax.f32 %v118_v11, 0.0 }
  0xea   :  { %v120_v15 = vpop.f32.mrf.mxu0 }
  0xeb   :  { %v131_v16 = vmul.f32 %v149_v13, %v123_v14 }
  0xec   :  { %v160_v17 = vpop.f32.mrf.mxu0 }
  0xed   :  { %132 = vadd.xlane.f32.xlu0 %v131_v16 }
 0x176   :  { %v133_v19 = vpop.xlane.xlu0 %132 }
 0x177   :  { %v136_v20 = vadd.f32 %v135_v18, %v133_v19 }
 0x179   :  { %138 = vst.msk [vmem:[%s274_s5] sm:$0xff] %vm137_vm4, %v136_v20 }
 0x17a   :  { %143 = vsyncpa [#allocation4], 1 }
 0x17b   :  { %144 = vsyncpa [#allocation6], 1 }

</bundles_post_ra>
